<compile_context>
chip_gen: v6e
topology: v6e:2x2x1
jax: 0.10.0
libtpu: 0.0.40
codegen_flags: <defaults>
</compile_context>

<pallas_src>
import jax
import jax.numpy as jnp
from jax.experimental import pallas as pl
from jax.experimental.pallas import tpu as pltpu


def _round_up(x, m):
    return (x + m - 1) // m * m


def _bilinear_attention_kernel(h_ref, wr_ref, m_ref, b_ref, o_ref):
    # h_ref : (TB, S, D)  VMEM   hidden states (native dtype, cast per-vreg)
    # wr_ref: (TB, 1, D)  VMEM   precomputed W @ r per batch row (f32)
    # m_ref : (TB, S, 1)  VMEM   attention mask (f32)
    # b_ref : (1,)        SMEM   bilinear bias scalar
    # o_ref : (TB, 1, D)  VMEM   updated representation block
    h = h_ref[...].astype(jnp.float32)                    # cast in-kernel (cheap VPU)
    wr = wr_ref[...]                                       # (TB, 1, D)
    m = m_ref[...]                                         # (TB, S, 1)
    bias = b_ref[0]                                        # scalar from SMEM

    # score[b,s] = h[b,s,:] . wr[b,:] + bias   (VPU mul + lane reduce, no MXU)
    scores = jnp.sum(h * wr, axis=-1, keepdims=True) + bias          # (TB,S,1)
    # softmask_with_mask: exp(tanh(score)), mask, normalize over sequence dim.
    e = jnp.exp(jnp.tanh(scores)) * m                                # (TB,S,1)
    denom = jnp.sum(e, axis=1, keepdims=True) + 1e-9                 # (TB,1,1)
    att = e / denom                      # exact divide (see correctness note)
    # out[b,:] = sum_s att[b,s] * h[b,s,:]   (VPU mul + sublane reduce)
    out = jnp.sum(att * h, axis=1, keepdims=True)                    # (TB,1,D)
    o_ref[...] = out.astype(o_ref.dtype)


def _vmem_limit_bytes():
    # ~3/4 of physical per-core VMEM, capped at 96 MiB.
    #   v5e / v6e (128 MiB) -> 96 MiB ; v7x (64 MiB per TC) -> 48 MiB.
    cap = 64 * 1024 * 1024  # conservative fallback (v7x per-TC)
    try:
        info = pltpu.get_tpu_info()
        cap = int(getattr(info, "vmem_capacity_bytes", cap) or cap)
    except Exception:
        pass
    return min(96 * 1024 * 1024, (cap * 3) // 4)


def _choose_block_b(B, S, D, h_itemsize, vmem_limit):
    # Per-batch-row VMEM footprint of ONE pipeline buffer, including the
    # lane-padded (S,1) mask tile and the sublane-padded (1,D) wr/out tiles.
    S_t = _round_up(S, 8)
    D_t = _round_up(D, 128)
    h_row = S_t * D_t * h_itemsize
    mask_row = S_t * 128 * 4          # last dim 1 lane-pads to 128 in VMEM
    wr_row = 8 * D_t * 4              # second-minor dim 1 sublane-pads to 8
    out_row = 8 * D_t * 4
    per_row = 2 * (h_row + mask_row + wr_row + out_row)   # x2: double-buffered
    budget = vmem_limit // 2          # leave half the limit as headroom
    tb_budget = max(1, budget // per_row)
    # Keep >= 4 grid steps whenever B allows (>= 2 pipelined steps per v7x TC).
    min_grid = 4 if B >= 4 else B
    tb_cap = max(1, B // max(1, min_grid))
    tb_max = max(1, min(B, tb_budget, tb_cap))
    # Largest divisor of B <= tb_max: no batch padding, no ragged last block.
    for d in range(tb_max, 0, -1):
        if B % d == 0:
            return d
    return 1


def bilinear_attention(hidden_states, representation, att_masks, weight, bias,
                       *, block_b=None):
    """hidden_states (B,S,D), representation (B,D), att_masks (B,S),
    weight (D,D) = nn.Bilinear weight[0], bias (1,)-ish. Returns (B,D)."""
    B, S, D = hidden_states.shape
    out_dtype = hidden_states.dtype
    h_itemsize = jnp.dtype(hidden_states.dtype).itemsize

    representation = representation.astype(jnp.float32)
    weight = weight.astype(jnp.float32)
    bias1 = jnp.asarray(bias, jnp.float32).reshape(-1)[:1]            # (1,)

    # Hoisted bilinear projection: one small f32-accurate MXU matmul in the
    # wrapper; the (D,D) weight never enters the kernel.
    wr = jnp.dot(representation, weight.T,
                 preferred_element_type=jnp.float32,
                 precision=jax.lax.Precision.HIGHEST)                 # (B,D)
    wr3 = wr[:, None, :]                                              # (B,1,D)
    m3 = att_masks.astype(jnp.float32)[:, :, None]                    # (B,S,1)

    vmem_limit = _vmem_limit_bytes()
    if block_b is None:
        block_b = _choose_block_b(B, S, D, h_itemsize, vmem_limit)
    assert B % block_b == 0, "block_b must divide the batch size"
    grid = B // block_b

    out = pl.pallas_call(
        _bilinear_attention_kernel,
        out_shape=jax.ShapeDtypeStruct((B, 1, D), out_dtype),
        grid_spec=pltpu.PrefetchScalarGridSpec(
            num_scalar_prefetch=0,
            grid=(grid,),
            in_specs=[
                pl.BlockSpec((block_b, S, D), lambda b: (b, 0, 0)),   # h (unpadded)
                pl.BlockSpec((block_b, 1, D), lambda b: (b, 0, 0)),   # wr
                pl.BlockSpec((block_b, S, 1), lambda b: (b, 0, 0)),   # mask
                pl.BlockSpec(memory_space=pltpu.MemorySpace.SMEM),    # bias scalar
            ],
            out_specs=pl.BlockSpec((block_b, 1, D), lambda b: (b, 0, 0)),
        ),
        compiler_params=pltpu.CompilerParams(
            dimension_semantics=("parallel",),
            vmem_limit_bytes=vmem_limit),
        cost_estimate=pl.CostEstimate(
            flops=4 * B * S * D,
            transcendentals=2 * B * S,
            bytes_accessed=(B * S * D * h_itemsize + 4 * B * S + 8 * B * D)),
    )(hidden_states, wr3, m3, bias1)

    return out[:, 0, :]


def _reference(hidden_states, representation, att_masks, weight, bias):
    # Pure-JAX reference mirroring the PyTorch forward exactly (f32 throughout).
    b0 = jnp.asarray(bias, jnp.float32).reshape(-1)[0]
    scores = jnp.einsum("bsi,ij,bj->bs", hidden_states, weight, representation,
                        precision=jax.lax.Precision.HIGHEST)
    scores = jnp.tanh(scores + b0)
    e = jnp.exp(scores) * att_masks
    att = e / (jnp.sum(e, axis=1, keepdims=True) + 1e-9)
    return jnp.sum(att[..., None] * hidden_states, axis=1)


if __name__ == "__main__":
    B, S, D = 2, 8, 32
    key = jax.random.PRNGKey(0)
    k_h, k_r, k_m, k_w = jax.random.split(key, 4)

    hidden_states = jax.random.normal(k_h, (B, S, D), dtype=jnp.float32)
    representation = jax.random.normal(k_r, (B, D), dtype=jnp.float32)
    # attention mask: first few tokens valid, rest padded (deterministic)
    valid_lens = jnp.array([6, 8], dtype=jnp.int32)
    att_masks = (jnp.arange(S)[None, :] < valid_lens[:, None]).astype(jnp.float32)

    # nn.Bilinear(D, D, 1): weight (1, D, D) ~ U(-0.1, 0.1), bias (1,) = 0
    weight = jax.random.uniform(k_w, (D, D), dtype=jnp.float32,
                                minval=-0.1, maxval=0.1)
    bias = jnp.zeros((1,), dtype=jnp.float32)

    out = bilinear_attention(hidden_states, representation, att_masks, weight, bias)
    out = jax.block_until_ready(out)

    ref = _reference(hidden_states, representation, att_masks, weight, bias)
    assert out.shape == (B, D)
    assert jnp.allclose(out, ref, atol=1e-4, rtol=1e-4), "mismatch vs reference"

    print("KERNEL_OK")
</pallas_src>

<mosaic_0001>
module attributes {stable_mosaic.version = 11 : i64} {
  func.func @_bilinear_attention_kernel(%arg0: i32, %arg1: memref<1x8x32xf32, #tpu.memory_space<vmem>>, %arg2: memref<1x1x32xf32, #tpu.memory_space<vmem>>, %arg3: memref<1x8x1xf32, #tpu.memory_space<vmem>>, %arg4: memref<1xf32, #tpu.memory_space<smem>>, %arg5: memref<1x1x32xf32, #tpu.memory_space<vmem>>) attributes {dimension_semantics = [#tpu.dimension_semantics<parallel>], iteration_bounds = array<i64: 2>, scalar_prefetch = 0 : i64, scratch_operands = 0 : i64, tpu.core_type = #tpu.core_type<tc>, window_params = [{transform_indices = @transform_0, window_bounds = array<i64: 1, 8, 32>}, {transform_indices = @transform_1, window_bounds = array<i64: 1, 1, 32>}, {transform_indices = @transform_2, window_bounds = array<i64: 1, 8, 1>}, {transform_indices = @transform_3, window_bounds = array<i64: 1>}, {transform_indices = @transform_4, window_bounds = array<i64: 1, 1, 32>}]} {
    %c0 = arith.constant 0 : index
    %c0_0 = arith.constant 0 : index
    %c0_1 = arith.constant 0 : index
    %0 = vector.load %arg1[%c0, %c0_0, %c0_1] : memref<1x8x32xf32, #tpu.memory_space<vmem>>, vector<1x8x32xf32>
    %c0_2 = arith.constant 0 : index
    %c0_3 = arith.constant 0 : index
    %c0_4 = arith.constant 0 : index
    %1 = vector.load %arg2[%c0_2, %c0_3, %c0_4] : memref<1x1x32xf32, #tpu.memory_space<vmem>>, vector<1x1x32xf32>
    %c0_5 = arith.constant 0 : index
    %c0_6 = arith.constant 0 : index
    %c0_7 = arith.constant 0 : index
    %2 = vector.load %arg3[%c0_5, %c0_6, %c0_7] : memref<1x8x1xf32, #tpu.memory_space<vmem>>, vector<1x8x1xf32>
    %c0_8 = arith.constant 0 : index
    %3 = memref.load %arg4[%c0_8] : memref<1xf32, #tpu.memory_space<smem>>
    %4 = vector.broadcast %1 : vector<1x1x32xf32> to vector<1x8x32xf32>
    %5 = arith.mulf %0, %4 : vector<1x8x32xf32>
    %cst = arith.constant dense<0.000000e+00> : vector<1x8xf32>
    %6 = vector.multi_reduction <add>, %5, %cst [2] : vector<1x8x32xf32> to vector<1x8xf32>
    %7 = vector.shape_cast %6 : vector<1x8xf32> to vector<1x8x1xf32>
    %8 = vector.broadcast %3 : f32 to vector<1x8x1xf32>
    %9 = arith.addf %7, %8 : vector<1x8x1xf32>
    %10 = math.tanh %9 : vector<1x8x1xf32>
    %11 = math.exp %10 : vector<1x8x1xf32>
    %12 = arith.mulf %11, %2 : vector<1x8x1xf32>
    %cst_9 = arith.constant dense<0.000000e+00> : vector<1x1xf32>
    %13 = vector.multi_reduction <add>, %12, %cst_9 [1] : vector<1x8x1xf32> to vector<1x1xf32>
    %14 = vector.shape_cast %13 : vector<1x1xf32> to vector<1x1x1xf32>
    %cst_10 = arith.constant 9.99999971E-10 : f32
    %15 = vector.broadcast %cst_10 : f32 to vector<1x1x1xf32>
    %16 = arith.addf %14, %15 : vector<1x1x1xf32>
    %17 = vector.broadcast %16 : vector<1x1x1xf32> to vector<1x8x1xf32>
    %18 = arith.divf %12, %17 : vector<1x8x1xf32>
    %19 = vector.broadcast %18 : vector<1x8x1xf32> to vector<1x8x32xf32>
    %20 = arith.mulf %19, %0 : vector<1x8x32xf32>
    %cst_11 = arith.constant dense<0.000000e+00> : vector<1x32xf32>
    %21 = vector.multi_reduction <add>, %20, %cst_11 [1] : vector<1x8x32xf32> to vector<1x32xf32>
    %22 = vector.shape_cast %21 : vector<1x32xf32> to vector<1x1x32xf32>
    %c0_12 = arith.constant 0 : index
    %c0_13 = arith.constant 0 : index
    %c0_14 = arith.constant 0 : index
    %23 = vector.load %arg5[%c0_12, %c0_13, %c0_14] : memref<1x1x32xf32, #tpu.memory_space<vmem>>, vector<1x1x32xf32>
    tpu.vector_store %arg5[%c0_12, %c0_13, %c0_14], %22 {strides = array<i32>} : memref<1x1x32xf32, #tpu.memory_space<vmem>>, vector<1x1x32xf32>,
    return
  }
  func.func @transform_0(%arg0: i32) -> (i32, i32, i32) {
    %c0_i32 = arith.constant 0 : i32
    %c0_i32_0 = arith.constant 0 : i32
    %c0_i32_1 = arith.constant 0 : i32
    return %arg0, %c0_i32, %c0_i32_0 : i32, i32, i32
  }
  func.func @transform_1(%arg0: i32) -> (i32, i32, i32) {
    %c0_i32 = arith.constant 0 : i32
    %c0_i32_0 = arith.constant 0 : i32
    %c0_i32_1 = arith.constant 0 : i32
    return %arg0, %c0_i32, %c0_i32_0 : i32, i32, i32
  }
  func.func @transform_2(%arg0: i32) -> (i32, i32, i32) {
    %c0_i32 = arith.constant 0 : i32
    %c0_i32_0 = arith.constant 0 : i32
    %c0_i32_1 = arith.constant 0 : i32
    return %arg0, %c0_i32, %c0_i32_0 : i32, i32, i32
  }
  func.func @transform_3(%arg0: i32) -> i32 {
    %c0_i32 = arith.constant 0 : i32
    %c0_i32_0 = arith.constant 0 : i32
    return %c0_i32 : i32
  }
  func.func @transform_4(%arg0: i32) -> (i32, i32, i32) {
    %c0_i32 = arith.constant 0 : i32
    %c0_i32_0 = arith.constant 0 : i32
    %c0_i32_1 = arith.constant 0 : i32
    return %arg0, %c0_i32, %c0_i32_0 : i32, i32, i32
  }
}

</mosaic_0001>

<bundles_post_ra>
// kernel: tpu_custom_call.1
= control target key start
LH: loop header
LB: loop body
LE: loop exit
PB: predicated region body
PF: predicated region fallthrough
CT: control target
= control target key end

     0   :  { %s604_s0 = inlined_call_operand.vmem [shape: f32[2,8,32], index: 0, kind: input, shape index: {}]   ;;  %s605_s1 = inlined_call_operand.vmem [shape: f32[2,1,32], index: 1, kind: input, shape index: {}]   ;;  %s606_s2 = inlined_call_operand.vmem [shape: f32[2,8,1], index: 2, kind: input, shape index: {}]   ;;  %s607_s3 = inlined_call_operand.<no memory space> [shape: f32[1], index: 3, kind: input, shape index: {}]   ;;  %s608_s4 = inlined_call_operand.hbm [shape: f32[2,1,32], index: 4, kind: output, shape index: {}]  }
   0x1   :  { %9 = sst [smem:[#allocation2]] %s607_s3 }
   0x2   :  { %10 = vsyncpa [#allocation4], 0 }
   0x3   :  { %12 = vsyncpa [#allocation4 + $0x1], 0  ;;  %s509_s17 = smov 0   ;;  %s511_s18 = smov 0  }
   0x4   :  { %s513_s19 = smov 0   ;;  %s515_s20 = smov 0  }
   0x5 LB: > { %s530_s3 = sadd.s32 4294967295, %s477_s20   ;;  %s360_s21 = sadd.s32 4294967294, %s477_s20   ;;  %s477_s20 = sphi %s515_s20, %s614_s20   ;;  %s473_s19 = sphi %s513_s19, %s613_s19   ;;  %s469_s18 = sphi %s511_s18, %s612_s18   ;;  %s465_s17 = sphi %s509_s17, %s611_s17  }
   0x6   : > { %s534_s22 = sadd.s32 1, %s477_s20   ;;  %s124_s23 = sadd.s32 1, %s473_s19 }
   0x7   : > { %s121_s24 = ssub.s32 %s477_s20, %s534_s22  ;;  %p134_p0 = scmp.ne.s32.totalorder %s473_s19, %s469_s18 }
   0x8   : > { %p122_p1 = scmp.eq.s32.totalorder %s121_s24, 0  ;;  %p135_p2 = scmp.eq.s32.totalorder %s530_s3, 1 }
   0x9   : > { %p140_p3 = scmp.ne.s32.totalorder %s469_s18, %s465_s17  ;;  %p141_p4 = scmp.eq.s32.totalorder %s360_s21, 1 }
   0xa   : > { %s545_s25 = scalar_select %p122_p1, %s473_s19, %s124_s23  }
   0xb   : > { %p547_p5 = por %p135_p2, %p134_p0  ;;  %p551_p6 = por %p141_p4, %p140_p3 }
   0xc   : > { %p363_p7 = scmp.ge.s32.totalorder %s477_s20, 1  ;;  %p182_p8 = scmp.lt.s32.totalorder %s477_s20, 3 }
   0xe   : > { %p183_p9 = pnand %p363_p7, %p182_p8 }
   0xf   : > { %p213_p10 = scmp.lt.s32.totalorder (!%p183_p9), %s530_s3, 1  ;;  %s227_s10 = sld [smem:[#allocation2]] (!%p183_p9) }
  0x10   : > { %186 = sbr.rel (%p183_p9) target bundleno = 384 (0x180), region = 36  ;;  %s211_s14 = sand.u32 (!%p183_p9), 1, %s469_s18  }
  0x11   : > { %s367_s15 = sshll.u32 (!%p183_p9), %s530_s3, 4  ;;  %s212_s16 = scalar_lea.vmem (!%p183_p9), [#allocation3], %s211_s14 }
  0x12   : > { %s284_s21 = sshll.u32 (!%p183_p9), %s212_s16, 4  ;;  %s480_s5 = smov (!%p183_p9), [#allocation3]   ;;  %s285_s21 = int_to_ptr.vmem [resolvable:$true] %s284_s21 }
  0x13   : > { %s417_s30 = scalar_lea.vmem (!%p183_p9), %s285_s21, 16 }
  0x14   : > { %p418_p11 = scmp.ne.s32.totalorder (!%p183_p9), %s285_s21, %s417_s30 }
  0x15   : > { %s214_s28 = scalar_select %p213_p10, %s530_s3, 1  ;;  %vm235_vm0 = vcmask 261120   ;;  %v479_v4 = vmov 0   ;;  %v239_v5 = vstv %s227_s10  ;;  %vm245_vm1 = vcmask 7168  }
  0x16   : > { %410 = vset.pattern.permute.xlu0 %v479_v4  ;;  %vm269_vm2 = vcmask 253952   ;;  %p419_p12 = pnand %p418_p11, %p547_p5 }
  0x17   : > { %s364_s29 = sshll.u32 %s214_s28, 3  ;;  %s219_s6 = scalar_lea.vmem %s605_s1, %s214_s28 }
  0x18   : > { %s216_s9 = scalar_lea.vmem %s604_s0, %s364_s29  ;;  %v366_v0 = vld [vmem:[%s219_s6] ss:$0 sm:$0xff]  ;;  %s223_s13 = scalar_lea.vmem %s606_s2, %s364_s29 }
  0x19   : > { %v224_v1 = vld [vmem:[%s216_s9] sm:$0xff]  ;;  %s282_s28 = scalar_lea.hbm %s608_s4, %s367_s15  ;;  %s272_s29 = scalar_lea.sflag [#allocation4], %s211_s14 }
  0x1a   : > { %v234_v2 = vmul.f32 %v366_v0, %v224_v1  ;;  %v226_v10 = vld [vmem:[%s223_s13] sm:$0xff]  ;;  %p420_p13 = pneg %p419_p12  ;;  %s421_s6 = sshll.u32 %s480_s5, 4  ;;  %s422_s6 = int_to_ptr.vmem [resolvable:$false] %s421_s6 }
  0x1b   : > { %s423_s3 = scalar_lea.vmem %s422_s6, 32  ;;  %p424_p0 = scmp.lt.s32.totalorder %s285_s21, %s422_s6 }
  0x1c   : > { %v236_v3 = vsel %vm235_vm0, %v234_v2, 0.0  ;;  %p425_p1 = scmp.lt.s32.totalorder %s423_s3, %s417_s30 }
  0x1d   : > { %237 = vadd.xlane.f32.xlu0 %v236_v3 }
  0x1e   : > { %p426_p2 = por %p425_p1, %p424_p0 }
  0x20   : > { %p427_p3 = pnand %p426_p2, %p420_p13 }
  0xa6   : > { %v238_v6 = vpop.xlane.xlu0 %237 }
  0xa7   : > { %v240_v7 = vadd.f32 %v239_v5, %v238_v6 }
  0xa9   : > { %411 = vtanh.f32 %v240_v7 }
  0xb6   : > { %v412_v8 = vpop.eup %411 }
  0xb7   : > { %v242_v9 = vmul.f32 1.442695, %v412_v8 }
  0xb9   : > { %413 = vpow2.f32 %v242_v9 }
  0xc6   : > { %v414_v11 = vpop.eup %413 }
  0xc7   : > { %v244_v12 = vmul.f32 %v414_v11, %v226_v10 }
  0xc9   : > { %v246_v13 = vsel %vm245_vm1, %v244_v12, 0.0 }
  0xca   : > { %v247_v14 = vrot.slane %v246_v13, 4 }
  0xcc   : > { %v248_v15 = vadd.f32 %v247_v14, %v246_v13 }
  0xce   : > { %v249_v16 = vrot.slane %v248_v15, 2 }
  0xd0   : > { %v250_v17 = vadd.f32 %v249_v16, %v248_v15 }
  0xd2   : > { %v251_v18 = vrot.slane %v250_v17, 1 }
  0xd4   : > { %v252_v19 = vadd.f32 %v251_v18, %v250_v17 }
  0xd6   : > { %v253_v20 = vadd.f32 1e-09, %v252_v19 }
  0xd8   : > { %415 = vrcp.f32 %v253_v20 }
  0xe5   : > { %v416_v21 = vpop.eup %415 }
  0xe6   : > { %v255_v22 = vmul.f32 %v416_v21, %v244_v12 }
  0xe8   : > { %258 = vperm.xlu0 %410, %v255_v22  }
 0x163   : > { %v259_v23 = vpop.permute.xlu0 %258 }
 0x164   : > { %v261_v24 = vmul.f32 %v259_v23, %v224_v1 }
 0x166   : > { %v262_v25 = vsel %vm235_vm0, %v261_v24, 0.0 }
 0x167   : > { %v263_v26 = vrot.slane %v262_v25, 4 }
 0x169   : > { %v264_v27 = vadd.f32 %v263_v26, %v262_v25 }
 0x16b   : > { %v265_v28 = vrot.slane %v264_v27, 2 }
 0x16d   : > { %v266_v29 = vadd.f32 %v265_v28, %v264_v27 }
 0x16f   : > { %v267_v30 = vrot.slane %v266_v29, 1 }
 0x171   : > { %v268_v31 = vadd.f32 %v267_v30, %v266_v29 }
 0x173   : > { %270 = vst.msk [vmem:[%s212_s16] sm:$0x1] %vm269_vm2, %v268_v31 }
 0x174   : > { %430 = shalt.err (!%p427_p3)
}
 0x175   : > { %s431_s7 = scalar_lea.hbm %s282_s28, 16  ;;  %s435_s10 = scalar_lea.hbm %s608_s4, 32 }
 0x176   : > { %p432_p4 = scmp.ne.s32.totalorder %s282_s28, %s431_s7  ;;  %p436_p9 = scmp.lt.s32.totalorder %s282_s28, %s608_s4 }
 0x177   : > { %p437_p10 = scmp.lt.s32.totalorder %s435_s10, %s431_s7 }
 0x178   : > { %p433_p7 = pnand %p432_p4, %p547_p5 }
 0x179   : > { %p438_p11 = por %p437_p10, %p436_p9 }
 0x17a   : > { %p434_p8 = pneg %p433_p7 }
 0x17c   : > { %p439_p12 = pnand %p438_p11, %p434_p8 }
 0x17e   : > { %442 = shalt.err (!%p439_p12)
}
 0x17f   : > { %370 = dma.vmem_to_hbm [thread:$0]  (%p547_p5), %s285_s21, 16, %s282_s28, %s272_s29  }
 0x180 PF: > { %p376_p13 = scmp.ge.s32.totalorder %s477_s20, 2  ;;  %s296_s13 = sand.u32 1, %s465_s17  }
 0x181   : > { %s297_s14 = scalar_lea.sflag [#allocation4], %s296_s13 }
 0x182   : > { %p373_p0 = pnand %p376_p13, %p551_p6 }
 0x184   : > { %p374_p1 = pneg %p373_p0 }
 0x186   : > { %460 = dma.done.wait (%p374_p1), %s297_s14, 16  }
 0x187   : > { %462 = vsyncadd (%p374_p1), %s297_s14, 4294967280  ;;  %p15_p2 = scmp.ge.s32.totalorder %s534_s22, 4   ;;  %s611_s17 = smov %s469_s18 }
 0x188   : > { %s612_s18 = smov %s473_s19  ;;  %s613_s19 = smov %s545_s25 }
 0x189   : > { %s614_s20 = smov %s534_s22  ;;  %17 = sbr.rel (!%p15_p2) target bundleno = 5 (0x5), region = 77 }
 0x18e   :  { %301 = vsyncpa [#allocation4], 1 }
 0x18f   :  { %303 = vsyncpa [#allocation4 + $0x1], 1 }

</bundles_post_ra>
